<compile_context>
chip_gen: v6e
topology: v6e:2x2x1
jax: 0.10.0
libtpu: 0.0.40
codegen_flags: <defaults>
</compile_context>

<pallas_src>
from functools import partial

import jax
import jax.numpy as jnp
from jax.experimental import pallas as pl
from jax.experimental.pallas import tpu as pltpu

N_ACTIONS = 16          # heads unused by forward()
N_INPUTS = 17
H1, H2, H3 = 64, 128, 64

MAX_BATCH_TILE = 2048   # ~4 MiB double-buffered VMEM at f32 -> safe on v5e/v6e/v7x


def _round_up(n, m):
    return -(-n // m) * m


def _mlp_kernel(x_ref, w1_ref, b1_ref, w2_ref, b2_ref, w3_ref, b3_ref, o_ref):
    # layer 1: [bt, 17] @ [17, 64], f32 accumulate
    h = jnp.dot(x_ref[...], w1_ref[...], preferred_element_type=jnp.float32)
    h = jnp.maximum(h + b1_ref[...], 0.0)
    # layer 2: [bt, 64] @ [64, 128]
    h = jnp.dot(h, w2_ref[...], preferred_element_type=jnp.float32)
    h = jnp.maximum(h + b2_ref[...], 0.0)
    # layer 3: [bt, 128] @ [128, 64]  (true output width, no padded columns)
    h = jnp.dot(h, w3_ref[...], preferred_element_type=jnp.float32)
    h = jnp.maximum(h + b3_ref[...], 0.0)
    o_ref[...] = h.astype(o_ref.dtype)


@partial(jax.jit, static_argnames=("batch_tile",))
def actor_critic_forward(x, params, *, batch_tile=None):
    """Runs ActorCritic.forward as one Pallas kernel.

    x: [B, N_INPUTS] float32
    params: w1 [17,64], b1 [1,64], w2 [64,128], b2 [1,128], w3 [128,64],
            b3 [1,64]  (weights stored as [in, out] = PyTorch weight^T)
    Returns: [B, H3] float32
    """
    B = x.shape[0]
    if batch_tile is None:
        # Aim for >= 2 grid steps (so v7x's two TensorCores both get batch
        # tiles) without over-padding tiny batches; tiles are multiples of 16.
        half = _round_up(max(pl.cdiv(B, 2), 1), 16)
        batch_tile = max(16, min(MAX_BATCH_TILE, half))
    Bp = _round_up(B, batch_tile)

    # Only batch-dim zero padding (no dtype cast, no lane padding); fused by jit.
    xp = x if Bp == B else jnp.pad(x, ((0, Bp - B), (0, 0)))

    w1 = params["w1"].astype(jnp.float32)
    b1 = params["b1"].astype(jnp.float32)
    w2 = params["w2"].astype(jnp.float32)
    b2 = params["b2"].astype(jnp.float32)
    w3 = params["w3"].astype(jnp.float32)
    b3 = params["b3"].astype(jnp.float32)

    grid = (Bp // batch_tile,)

    out = pl.pallas_call(
        _mlp_kernel,
        out_shape=jax.ShapeDtypeStruct((Bp, H3), jnp.float32),
        grid_spec=pl.GridSpec(
            grid=grid,
            in_specs=[
                # batch tile of activations (last dim == full array dim -> legal)
                pl.BlockSpec((batch_tile, N_INPUTS), lambda i: (i, 0)),
                # weights / biases: constant index_map -> resident in VMEM
                pl.BlockSpec((N_INPUTS, H1), lambda i: (0, 0)),
                pl.BlockSpec((1, H1), lambda i: (0, 0)),
                pl.BlockSpec((H1, H2), lambda i: (0, 0)),
                pl.BlockSpec((1, H2), lambda i: (0, 0)),
                pl.BlockSpec((H2, H3), lambda i: (0, 0)),
                pl.BlockSpec((1, H3), lambda i: (0, 0)),
            ],
            out_specs=pl.BlockSpec((batch_tile, H3), lambda i: (i, 0)),
        ),
        compiler_params=pltpu.CompilerParams(
            # batch axis is independent -> shardable across cores (megacore)
            dimension_semantics=("parallel",),
        ),
    )(xp, w1, b1, w2, b2, w3, b3)

    # strip batch padding only (output width is already exactly H3)
    return out[:B]


def init_params(key):
    """Deterministic init mimicking nn.Linear (uniform(-1/sqrt(in), 1/sqrt(in)))."""
    ks = jax.random.split(key, 6)

    def linear(kw, kb, fan_in, fan_out):
        bound = 1.0 / jnp.sqrt(fan_in)
        # stored as [in, out] (transpose of torch's [out, in])
        w = jax.random.uniform(kw, (fan_in, fan_out), jnp.float32, -bound, bound)
        b = jax.random.uniform(kb, (1, fan_out), jnp.float32, -bound, bound)
        return w, b

    w1, b1 = linear(ks[0], ks[1], N_INPUTS, H1)
    w2, b2 = linear(ks[2], ks[3], H1, H2)
    w3, b3 = linear(ks[4], ks[5], H2, H3)
    return {"w1": w1, "b1": b1, "w2": w2, "b2": b2, "w3": w3, "b3": b3}


def forward_ref(x, p):
    """Pure-JAX reference (f32 throughout, highest matmul precision)."""
    hp = jax.lax.Precision.HIGHEST
    h = jnp.maximum(jnp.dot(x, p["w1"], precision=hp) + p["b1"], 0.0)
    h = jnp.maximum(jnp.dot(h, p["w2"], precision=hp) + p["b2"], 0.0)
    h = jnp.maximum(jnp.dot(h, p["w3"], precision=hp) + p["b3"], 0.0)
    return h


if __name__ == "__main__":
    key = jax.random.PRNGKey(0)
    kx, kp, kx2 = jax.random.split(key, 3)
    params = init_params(kp)

    # small batch (tile auto-sizes to 16, grid = 1)
    B = 8
    x = jax.random.normal(kx, (B, N_INPUTS), dtype=jnp.float32)
    out = jax.block_until_ready(actor_critic_forward(x, params))
    ref = forward_ref(x, params)
    assert out.shape == (B, H3)
    assert jnp.allclose(out, ref, atol=2e-2, rtol=2e-2), "mismatch vs reference (B=8)"

    # ragged larger batch, default heuristic: tile=160, grid=2 (both TCs busy on v7x)
    B2 = 300
    x2 = jax.random.normal(kx2, (B2, N_INPUTS), dtype=jnp.float32)
    out2 = jax.block_until_ready(actor_critic_forward(x2, params))
    ref2 = forward_ref(x2, params)
    assert out2.shape == (B2, H3)
    assert jnp.allclose(out2, ref2, atol=2e-2, rtol=2e-2), "mismatch vs reference (B=300, auto tile)"

    # same batch with an explicit tile: exercises multi-step grid + batch padding path
    out3 = jax.block_until_ready(actor_critic_forward(x2, params, batch_tile=128))
    assert out3.shape == (B2, H3)
    assert jnp.allclose(out3, ref2, atol=2e-2, rtol=2e-2), "mismatch vs reference (B=300, tile=128)"

    print("KERNEL_OK")
</pallas_src>

<mosaic_0001>
module attributes {stable_mosaic.version = 11 : i64} {
  func.func @_mlp_kernel(%arg0: i32, %arg1: memref<16x17xf32, #tpu.memory_space<vmem>>, %arg2: memref<17x64xf32, #tpu.memory_space<vmem>>, %arg3: memref<1x64xf32, #tpu.memory_space<vmem>>, %arg4: memref<64x128xf32, #tpu.memory_space<vmem>>, %arg5: memref<1x128xf32, #tpu.memory_space<vmem>>, %arg6: memref<128x64xf32, #tpu.memory_space<vmem>>, %arg7: memref<1x64xf32, #tpu.memory_space<vmem>>, %arg8: memref<16x64xf32, #tpu.memory_space<vmem>>) attributes {dimension_semantics = [#tpu.dimension_semantics<parallel>], iteration_bounds = array<i64: 1>, scalar_prefetch = 0 : i64, scratch_operands = 0 : i64, tpu.core_type = #tpu.core_type<tc>, window_params = [{transform_indices = @transform_0, window_bounds = array<i64: 16, 17>}, {pipeline_mode = #tpu.pipeline_mode<synchronous>, transform_indices = @transform_1, window_bounds = array<i64: 17, 64>}, {pipeline_mode = #tpu.pipeline_mode<synchronous>, transform_indices = @transform_2, window_bounds = array<i64: 1, 64>}, {pipeline_mode = #tpu.pipeline_mode<synchronous>, transform_indices = @transform_3, window_bounds = array<i64: 64, 128>}, {pipeline_mode = #tpu.pipeline_mode<synchronous>, transform_indices = @transform_4, window_bounds = array<i64: 1, 128>}, {pipeline_mode = #tpu.pipeline_mode<synchronous>, transform_indices = @transform_5, window_bounds = array<i64: 128, 64>}, {pipeline_mode = #tpu.pipeline_mode<synchronous>, transform_indices = @transform_6, window_bounds = array<i64: 1, 64>}, {transform_indices = @transform_7, window_bounds = array<i64: 16, 64>}]} {
    %c0 = arith.constant 0 : index
    %c0_0 = arith.constant 0 : index
    %0 = vector.load %arg1[%c0, %c0_0] : memref<16x17xf32, #tpu.memory_space<vmem>>, vector<16x17xf32>
    %c0_1 = arith.constant 0 : index
    %c0_2 = arith.constant 0 : index
    %1 = vector.load %arg2[%c0_1, %c0_2] : memref<17x64xf32, #tpu.memory_space<vmem>>, vector<17x64xf32>
    %cst = arith.constant dense<0.000000e+00> : vector<16x64xf32>
    %2 = tpu.matmul %0, %1, %cst {dimension_numbers = #tpu.dot_dimension_numbers<[1], [0], [0], [1], [0, 0, 1, 1], [], []>} : vector<16x17xf32>, vector<17x64xf32>, vector<16x64xf32> -> vector<16x64xf32>
    %c0_3 = arith.constant 0 : index
    %c0_4 = arith.constant 0 : index
    %3 = vector.load %arg3[%c0_3, %c0_4] : memref<1x64xf32, #tpu.memory_space<vmem>>, vector<1x64xf32>
    %4 = vector.broadcast %3 : vector<1x64xf32> to vector<16x64xf32>
    %5 = arith.addf %2, %4 : vector<16x64xf32>
    %cst_5 = arith.constant 0.000000e+00 : f32
    %6 = vector.broadcast %cst_5 : f32 to vector<16x64xf32>
    %7 = arith.maximumf %5, %6 : vector<16x64xf32>
    %c0_6 = arith.constant 0 : index
    %c0_7 = arith.constant 0 : index
    %8 = vector.load %arg4[%c0_6, %c0_7] : memref<64x128xf32, #tpu.memory_space<vmem>>, vector<64x128xf32>
    %cst_8 = arith.constant dense<0.000000e+00> : vector<16x128xf32>
    %9 = tpu.matmul %7, %8, %cst_8 {dimension_numbers = #tpu.dot_dimension_numbers<[1], [0], [0], [1], [0, 0, 1, 1], [], []>} : vector<16x64xf32>, vector<64x128xf32>, vector<16x128xf32> -> vector<16x128xf32>
    %c0_9 = arith.constant 0 : index
    %c0_10 = arith.constant 0 : index
    %10 = vector.load %arg5[%c0_9, %c0_10] : memref<1x128xf32, #tpu.memory_space<vmem>>, vector<1x128xf32>
    %11 = vector.broadcast %10 : vector<1x128xf32> to vector<16x128xf32>
    %12 = arith.addf %9, %11 : vector<16x128xf32>
    %cst_11 = arith.constant 0.000000e+00 : f32
    %13 = vector.broadcast %cst_11 : f32 to vector<16x128xf32>
    %14 = arith.maximumf %12, %13 : vector<16x128xf32>
    %c0_12 = arith.constant 0 : index
    %c0_13 = arith.constant 0 : index
    %15 = vector.load %arg6[%c0_12, %c0_13] : memref<128x64xf32, #tpu.memory_space<vmem>>, vector<128x64xf32>
    %cst_14 = arith.constant dense<0.000000e+00> : vector<16x64xf32>
    %16 = tpu.matmul %14, %15, %cst_14 {dimension_numbers = #tpu.dot_dimension_numbers<[1], [0], [0], [1], [0, 0, 1, 1], [], []>} : vector<16x128xf32>, vector<128x64xf32>, vector<16x64xf32> -> vector<16x64xf32>
    %c0_15 = arith.constant 0 : index
    %c0_16 = arith.constant 0 : index
    %17 = vector.load %arg7[%c0_15, %c0_16] : memref<1x64xf32, #tpu.memory_space<vmem>>, vector<1x64xf32>
    %18 = vector.broadcast %17 : vector<1x64xf32> to vector<16x64xf32>
    %19 = arith.addf %16, %18 : vector<16x64xf32>
    %cst_17 = arith.constant 0.000000e+00 : f32
    %20 = vector.broadcast %cst_17 : f32 to vector<16x64xf32>
    %21 = arith.maximumf %19, %20 : vector<16x64xf32>
    %c0_18 = arith.constant 0 : index
    %c0_19 = arith.constant 0 : index
    %22 = vector.load %arg8[%c0_18, %c0_19] : memref<16x64xf32, #tpu.memory_space<vmem>>, vector<16x64xf32>
    tpu.vector_store %arg8[%c0_18, %c0_19], %21 {strides = array<i32>} : memref<16x64xf32, #tpu.memory_space<vmem>>, vector<16x64xf32>,
    return
  }
  func.func @transform_0(%arg0: i32) -> (i32, i32) {
    %c0_i32 = arith.constant 0 : i32
    %c0_i32_0 = arith.constant 0 : i32
    return %arg0, %c0_i32 : i32, i32
  }
  func.func @transform_1(%arg0: i32) -> (i32, i32) {
    %c0_i32 = arith.constant 0 : i32
    %c0_i32_0 = arith.constant 0 : i32
    %c0_i32_1 = arith.constant 0 : i32
    return %c0_i32, %c0_i32_0 : i32, i32
  }
  func.func @transform_2(%arg0: i32) -> (i32, i32) {
    %c0_i32 = arith.constant 0 : i32
    %c0_i32_0 = arith.constant 0 : i32
    %c0_i32_1 = arith.constant 0 : i32
    return %c0_i32, %c0_i32_0 : i32, i32
  }
  func.func @transform_3(%arg0: i32) -> (i32, i32) {
    %c0_i32 = arith.constant 0 : i32
    %c0_i32_0 = arith.constant 0 : i32
    %c0_i32_1 = arith.constant 0 : i32
    return %c0_i32, %c0_i32_0 : i32, i32
  }
  func.func @transform_4(%arg0: i32) -> (i32, i32) {
    %c0_i32 = arith.constant 0 : i32
    %c0_i32_0 = arith.constant 0 : i32
    %c0_i32_1 = arith.constant 0 : i32
    return %c0_i32, %c0_i32_0 : i32, i32
  }
  func.func @transform_5(%arg0: i32) -> (i32, i32) {
    %c0_i32 = arith.constant 0 : i32
    %c0_i32_0 = arith.constant 0 : i32
    %c0_i32_1 = arith.constant 0 : i32
    return %c0_i32, %c0_i32_0 : i32, i32
  }
  func.func @transform_6(%arg0: i32) -> (i32, i32) {
    %c0_i32 = arith.constant 0 : i32
    %c0_i32_0 = arith.constant 0 : i32
    %c0_i32_1 = arith.constant 0 : i32
    return %c0_i32, %c0_i32_0 : i32, i32
  }
  func.func @transform_7(%arg0: i32) -> (i32, i32) {
    %c0_i32 = arith.constant 0 : i32
    %c0_i32_0 = arith.constant 0 : i32
    return %arg0, %c0_i32 : i32, i32
  }
}

</mosaic_0001>

<bundles_post_ra>
// kernel: actor_critic_forward.1
= control target key start
LH: loop header
LB: loop body
LE: loop exit
PB: predicated region body
PF: predicated region fallthrough
CT: control target
= control target key end

     0   :  { %vm45_vm0 = vcmask 1040384   ;;  %vm38_vm1 = vcmask 138240   ;;  %vm141_vm2 = vcmask 523264   ;;  %s583_s1 = inlined_call_operand.vmem [shape: f32[17,64], index: 1, kind: input, shape index: {}]   ;;  %s584_s0 = inlined_call_operand.vmem [shape: f32[16,17], index: 0, kind: input, shape index: {}]   ;;  %s585_s3 = inlined_call_operand.vmem [shape: f32[64,128], index: 3, kind: input, shape index: {}]   ;;  %s586_s5 = inlined_call_operand.vmem [shape: f32[128,64], index: 5, kind: input, shape index: {}]   ;;  %s587_s2 = inlined_call_operand.vmem [shape: f32[1,64], index: 2, kind: input, shape index: {}]   ;;  %s588_s4 = inlined_call_operand.vmem [shape: f32[1,128], index: 4, kind: input, shape index: {}]   ;;  %s589_s6 = inlined_call_operand.vmem [shape: f32[1,64], index: 6, kind: input, shape index: {}]   ;;  %s590_s7 = inlined_call_operand.vmem [shape: f32[16,64], index: 7, kind: output, shape index: {}]  }
   0x1   :  { %v30_v0 = vld [vmem:[%s583_s1 + $0x10] sm:$0x1]  ;;  %v29_v1 = vld [vmem:[%s583_s1 + $0x8] sm:$0xff]  ;;  %v26_v2 = vld [vmem:[%s584_s0] sm:$0xff] }
   0x2   :  { %372 = vmatprep.subr.msk.mxu1 %vm45_vm0, %v30_v0  ;;  %v28_v3 = vld [vmem:[%s583_s1] sm:$0xff]  ;;  %378 = vmatprep.mubr.msk.f32.mxu1 %vm38_vm1, %v26_v2  ;;  %v27_v4 = vld [vmem:[%s584_s0 + $0x8] sm:$0xff]  ;;  %v133_v5 = vld [vmem:[%s585_s3 + $0x38] sm:$0xff] }
   0x3   :  { %373 = vmatpush3.msk.msra.mxu1 %vm45_vm0, %v30_v0  ;;  %v132_v6 = vld [vmem:[%s585_s3 + $0x30] sm:$0xff]  ;;  %v131_v7 = vld [vmem:[%s585_s3 + $0x28] sm:$0xff]  ;;  %v130_v8 = vld [vmem:[%s585_s3 + $0x20] sm:$0xff] }
   0x4   :  { %374 = vmatprep.subr.mxu1 %v29_v1  ;;  %v129_v9 = vld [vmem:[%s585_s3 + $0x18] sm:$0xff]  ;;  %v128_v10 = vld [vmem:[%s585_s3 + $0x10] sm:$0xff]  ;;  %v127_v11 = vld [vmem:[%s585_s3 + $0x8] sm:$0xff] }
   0x5   :  { %375 = vmatpush3.msra.mxu1 %v29_v1  ;;  %v126_v12 = vld [vmem:[%s585_s3] sm:$0xff]  ;;  %v240_v13 = vld [vmem:[%s586_s5 + $0x78] sm:$0xff]  ;;  %v239_v14 = vld [vmem:[%s586_s5 + $0x70] sm:$0xff] }
   0x6   :  { %376 = vmatprep.subr.mxu1 %v28_v3  ;;  %400 = vmatprep.subr.mxu0 %v240_v13  ;;  %v238_v15 = vld [vmem:[%s586_s5 + $0x68] sm:$0xff]  ;;  %v237_v16 = vld [vmem:[%s586_s5 + $0x60] sm:$0xff]  ;;  %v236_v17 = vld [vmem:[%s586_s5 + $0x58] sm:$0xff] }
   0x7   :  { %377 = vmatpush3.msra.mxu1 %v28_v3  ;;  %401 = vmatpush3.msra.mxu0 %v240_v13  ;;  %v235_v18 = vld [vmem:[%s586_s5 + $0x50] sm:$0xff]  ;;  %v234_v19 = vld [vmem:[%s586_s5 + $0x48] sm:$0xff]  ;;  %v233_v20 = vld [vmem:[%s586_s5 + $0x40] sm:$0xff] }
   0x8   :  { %379 = vmatmul.mubr.msk.f32.vlgmr.msra.gmra.mxu1 %vm38_vm1, %v27_v4  ;;  %381 = vmatprep.subr.mxu1 %v133_v5  ;;  %v232_v21 = vld [vmem:[%s586_s5 + $0x38] sm:$0xff]  ;;  %v231_v22 = vld [vmem:[%s586_s5 + $0x30] sm:$0xff]  ;;  %v230_v23 = vld [vmem:[%s586_s5 + $0x28] sm:$0xff] }
   0x9   :  { %382 = vmatpush3.msra.mxu1 %v133_v5  ;;  %402 = vmatprep.subr.mxu0 %v239_v14  ;;  %v229_v24 = vld [vmem:[%s586_s5 + $0x20] sm:$0xff]  ;;  %v228_v32 = vld [vmem:[%s586_s5 + $0x18] sm:$0xff]  ;;  %v227_v33 = vld [vmem:[%s586_s5 + $0x10] sm:$0xff] }
   0xa   :  { %383 = vmatprep.subr.mxu1 %v132_v6  ;;  %403 = vmatpush3.msra.mxu0 %v239_v14  ;;  %v331_v25 = vld [vmem:[%s587_s2] ss:$0 sm:$0xff]  ;;  %v226_v34 = vld [vmem:[%s586_s5 + $0x8] sm:$0xff] }
   0xb   :  { %384 = vmatpush3.msra.mxu1 %v132_v6  ;;  %404 = vmatprep.subr.mxu0 %v238_v15  ;;  %v225_v35 = vld [vmem:[%s586_s5] sm:$0xff] }
   0xc   :  { %385 = vmatprep.subr.mxu1 %v131_v7  ;;  %405 = vmatpush3.msra.mxu0 %v238_v15  ;;  %v335_v36 = vld [vmem:[%s588_s4] ss:$0 sm:$0xff] }
   0xd   :  { %386 = vmatpush3.msra.mxu1 %v131_v7  ;;  %406 = vmatprep.subr.mxu0 %v237_v16  ;;  %v338_v43 = vld [vmem:[%s589_s6] ss:$0 sm:$0xff] }
   0xe   :  { %387 = vmatprep.subr.mxu1 %v130_v8  ;;  %407 = vmatpush3.msra.mxu0 %v237_v16 }
   0xf   :  { %388 = vmatpush3.msra.mxu1 %v130_v8  ;;  %408 = vmatprep.subr.mxu0 %v236_v17 }
  0x10   :  { %389 = vmatprep.subr.mxu1 %v129_v9  ;;  %409 = vmatpush3.msra.mxu0 %v236_v17 }
  0x11   :  { %390 = vmatpush3.msra.mxu1 %v129_v9  ;;  %410 = vmatprep.subr.mxu0 %v235_v18 }
  0x12   :  { %391 = vmatprep.subr.mxu1 %v128_v10  ;;  %411 = vmatpush3.msra.mxu0 %v235_v18 }
  0x13   :  { %392 = vmatpush3.msra.mxu1 %v128_v10  ;;  %412 = vmatprep.subr.mxu0 %v234_v19 }
  0x14   :  { %393 = vmatprep.subr.mxu1 %v127_v11  ;;  %413 = vmatpush3.msra.mxu0 %v234_v19 }
  0x15   :  { %394 = vmatpush3.msra.mxu1 %v127_v11  ;;  %414 = vmatprep.subr.mxu0 %v233_v20 }
  0x16   :  { %395 = vmatprep.subr.mxu1 %v126_v12  ;;  %415 = vmatpush3.msra.mxu0 %v233_v20 }
  0x17   :  { %396 = vmatpush3.msra.mxu1 %v126_v12  ;;  %416 = vmatprep.subr.mxu0 %v232_v21 }
  0x18   :  { %417 = vmatpush3.msra.mxu0 %v232_v21 }
  0x19   :  { %418 = vmatprep.subr.mxu0 %v231_v22 }
  0x1a   :  { %419 = vmatpush3.msra.mxu0 %v231_v22 }
  0x1b   :  { %420 = vmatprep.subr.mxu0 %v230_v23 }
  0x1c   :  { %421 = vmatpush3.msra.mxu0 %v230_v23 }
  0x1d   :  { %422 = vmatprep.subr.mxu0 %v229_v24 }
  0x1e   :  { %423 = vmatpush3.msra.mxu0 %v229_v24 }
  0x1f   :  { %424 = vmatprep.subr.mxu0 %v228_v32 }
  0x20   :  { %425 = vmatpush3.msra.mxu0 %v228_v32 }
  0x21   :  { %426 = vmatprep.subr.mxu0 %v227_v33 }
  0x22   :  { %427 = vmatpush3.msra.mxu0 %v227_v33 }
  0x23   :  { %428 = vmatprep.subr.mxu0 %v226_v34 }
  0x24   :  { %429 = vmatpush3.msra.mxu0 %v226_v34 }
  0x25   :  { %430 = vmatprep.subr.mxu0 %v225_v35 }
  0x26   :  { %431 = vmatpush3.msra.mxu0 %v225_v35 }
  0xc8   :  { %v380_v26 = vpop.f32.mrf.mxu1 }
  0xc9   :  { %v121_v27 = vadd.f32 %v380_v26, %v331_v25 }
  0xca   :  { %v115_v28 = vpop.f32.mrf.mxu1 }
  0xcb   :  { %v116_v29 = vadd.f32 %v331_v25, %v115_v28  ;;  %v125_v31 = vmax.f32 %v121_v27, 0.0 }
  0xcd   :  { %v124_v30 = vmax.f32 %v116_v29, 0.0 }
  0xcf   :  { %397 = vmatprep.mubr.msk.f32.mxu1 %vm141_vm2, %v124_v30 }
  0xd0   :  { %398 = vmatmul.mubr.msk.f32.vlgmr.msra.gmra.mxu1 %vm141_vm2, %v125_v31 }
 0x190   :  { %v399_v37 = vpop.f32.mrf.mxu1 }
 0x191   :  { %v220_v38 = vadd.f32 %v399_v37, %v335_v36 }
 0x192   :  { %v214_v39 = vpop.f32.mrf.mxu1 }
 0x193   :  { %v215_v40 = vadd.f32 %v335_v36, %v214_v39  ;;  %v224_v42 = vmax.f32 %v220_v38, 0.0 }
 0x195   :  { %v223_v41 = vmax.f32 %v215_v40, 0.0 }
 0x197   :  { %432 = vmatprep.mubr.f32.mxu0 %v223_v41 }
 0x198   :  { %433 = vmatmul.mubr.f32.vlgmr.msra.gmra.mxu0 %v224_v42 }
 0x258   :  { %v434_v44 = vpop.f32.mrf.mxu0 }
 0x259   :  { %v320_v45 = vadd.f32 %v434_v44, %v338_v43 }
 0x25a   :  { %v314_v46 = vpop.f32.mrf.mxu0 }
 0x25b   :  { %v324_v47 = vmax.f32 %v320_v45, 0.0  ;;  %v315_v48 = vadd.f32 %v338_v43, %v314_v46 }
 0x25d   :  { %326 = vst.msk [vmem:[%s590_s7 + $0x8] sm:$0xff] %vm141_vm2, %v324_v47  ;;  %v323_v49 = vmax.f32 %v315_v48, 0.0 }
 0x25f   :  { %325 = vst.msk [vmem:[%s590_s7] sm:$0xff] %vm141_vm2, %v323_v49 }

</bundles_post_ra>
